<compile_context>
chip_gen: v5e
topology: v5e:2x2
jax: 0.10.0
libtpu: 0.0.40
codegen_flags: <defaults>
</compile_context>

<pallas_src>
import functools

import jax
import jax.numpy as jnp
from jax.experimental import pallas as pl
from jax.experimental.pallas import tpu as pltpu

_LANES = 128


def _round_up(n, m):
    return (n + m - 1) // m * m


def _slab_layout(input_dim, hidden_dim, output_dim):
    """Row offsets (8-aligned) of each pre-transposed parameter inside the slab."""
    off_w1 = 0                                     # W1^T : (hidden, input)
    off_w2 = _round_up(off_w1 + hidden_dim, 8)     # W2^T : (hidden, hidden)
    off_w3 = _round_up(off_w2 + hidden_dim, 8)     # W3^T : (output, hidden)
    rows = _round_up(off_w3 + output_dim, 8)
    bias_col = max(input_dim, hidden_dim)          # biases live in the last column
    cols = bias_col + 1
    return dict(w1=off_w1, w2=off_w2, w3=off_w3, bias_col=bias_col,
                rows=rows, cols=cols)


def pack_params(params, input_dim, hidden_dim, output_dim, dtype=jnp.float32):
    """Pack (in,out)-layout weights + biases into one slab (once per policy update).

    NOTE: PyTorch nn.Linear stores weight as (out, in); pass `weight.T` (i.e. the
    (in, out) orientation) here.  init_params below already emits (in, out).
    """
    lay = _slab_layout(input_dim, hidden_dim, output_dim)
    bc = lay["bias_col"]
    slab = jnp.zeros((lay["rows"], lay["cols"]), dtype)
    slab = slab.at[lay["w1"]:lay["w1"] + hidden_dim, :input_dim].set(
        params["w1"].T.astype(dtype))
    slab = slab.at[lay["w1"]:lay["w1"] + hidden_dim, bc].set(
        params["b1"].reshape(-1).astype(dtype))
    slab = slab.at[lay["w2"]:lay["w2"] + hidden_dim, :hidden_dim].set(
        params["w2"].T.astype(dtype))
    slab = slab.at[lay["w2"]:lay["w2"] + hidden_dim, bc].set(
        params["b2"].reshape(-1).astype(dtype))
    slab = slab.at[lay["w3"]:lay["w3"] + output_dim, :hidden_dim].set(
        params["w3"].T.astype(dtype))
    slab = slab.at[lay["w3"]:lay["w3"] + output_dim, bc].set(
        params["b3"].reshape(-1).astype(dtype))
    return slab


def _policy_mlp_kernel(xT_ref, p_ref, oT_ref, *, input_dim, hidden_dim, output_dim, lay):
    # One lane-dense batch tile per grid step; the parameter slab is VMEM-resident
    # (constant index_map) so it is DMA'd once for the whole grid.
    bc = lay["bias_col"]
    pdt = p_ref.dtype
    xT = xT_ref[...]                                               # (input_dim, tb)

    w1t = p_ref[lay["w1"]:lay["w1"] + hidden_dim, :input_dim]      # (hidden, in)
    b1 = p_ref[lay["w1"]:lay["w1"] + hidden_dim, bc:bc + 1]        # (hidden, 1)
    w2t = p_ref[lay["w2"]:lay["w2"] + hidden_dim, :hidden_dim]     # (hidden, hidden)
    b2 = p_ref[lay["w2"]:lay["w2"] + hidden_dim, bc:bc + 1]
    w3t = p_ref[lay["w3"]:lay["w3"] + output_dim, :hidden_dim]     # (out, hidden)
    b3 = p_ref[lay["w3"]:lay["w3"] + output_dim, bc:bc + 1]        # (out, 1)

    # Activations are (features, tb): batch on the lane axis, f32 accumulation.
    h1 = jnp.maximum(
        jnp.dot(w1t, xT.astype(pdt), preferred_element_type=jnp.float32) + b1, 0.0)
    h2 = jnp.maximum(
        jnp.dot(w2t, h1.astype(pdt), preferred_element_type=jnp.float32) + b2, 0.0)
    # Last layer kept on the MXU; a VPU/XLU broadcast-mul + sublane-reduce variant
    # would avoid the tiny M=output_dim matmul but is a minor win here.
    logits = jnp.dot(w3t, h2.astype(pdt), preferred_element_type=jnp.float32) + b3

    # Numerically-stable softmax over the (small) feature/sublane axis; exact divide
    # so every column sums to 1 (matches nn.Softmax(dim=-1)).
    m = jnp.max(logits, axis=0, keepdims=True)                     # (1, tb)
    e = jnp.exp(logits - m)
    denom = jnp.sum(e, axis=0, keepdims=True)                      # (1, tb)
    oT_ref[...] = (e / denom).astype(oT_ref.dtype)
    # TODO(synk): for the RL rollout loop, fuse Gumbel-max action sampling + log-prob
    # output in-kernel (pltpu.prng_seed / pltpu.prng_random_bits) to drop the second
    # dispatch and the (batch, n_actions) output entirely.


def _batch_tiling(batch, block_batch):
    """Pick (tile, padded_batch): tile = k*128 with k dividing padded/128 (no pad
    beyond the 128 round-up), k*128 <= block_batch, and >=2 grid steps whenever
    there are >=2 lane-blocks so a v7x megacore shards the 'parallel' axis."""
    padded = _round_up(max(batch, 1), _LANES)
    nb = padded // _LANES
    k_cap = max(1, block_batch // _LANES)
    if nb >= 2:
        k_cap = min(k_cap, nb // 2)
    k = 1
    for cand in range(min(k_cap, nb), 0, -1):
        if nb % cand == 0:
            k = cand
            break
    return k * _LANES, padded


def policy_network_forward(x, param_slab, *, input_dim, hidden_dim, output_dim,
                           block_batch=4096):
    """x: (batch, input_dim). Returns (batch, output_dim) softmax probabilities."""
    batch = x.shape[0]
    assert x.shape[1] == input_dim
    lay = _slab_layout(input_dim, hidden_dim, output_dim)
    assert param_slab.shape == (lay["rows"], lay["cols"])

    tb, padded = _batch_tiling(batch, block_batch)

    # Lane-dense layout: batch on the 128-lane axis.  (At rollout scale, produce the
    # observation buffer directly as (input_dim, batch) to skip this transpose copy.)
    xT = jnp.pad(x.T, ((0, 0), (0, padded - batch)))

    kernel = functools.partial(_policy_mlp_kernel, input_dim=input_dim,
                               hidden_dim=hidden_dim, output_dim=output_dim, lay=lay)

    outT = pl.pallas_call(
        kernel,
        out_shape=jax.ShapeDtypeStruct((output_dim, padded), jnp.float32),
        grid=(padded // tb,),
        in_specs=[
            pl.BlockSpec((input_dim, tb), lambda i: (0, i)),              # x tile
            pl.BlockSpec((lay["rows"], lay["cols"]), lambda i: (0, 0)),   # pinned slab
        ],
        out_specs=pl.BlockSpec((output_dim, tb), lambda i: (0, i)),       # lane-dense
        compiler_params=pltpu.CompilerParams(dimension_semantics=("parallel",)),
    )(xT, param_slab)
    return outT[:, :batch].T


def init_params(key, input_dim, hidden_dim, output_dim):
    """Deterministic synthetic init (uniform, PyTorch-Linear-style bounds)."""
    ks = jax.random.split(key, 6)

    def linear(kw, kb, fan_in, fan_out):
        bound = 1.0 / jnp.sqrt(fan_in)
        # stored as (in, out) so the reference can do x @ W directly
        w = jax.random.uniform(kw, (fan_in, fan_out), jnp.float32, -bound, bound)
        b = jax.random.uniform(kb, (1, fan_out), jnp.float32, -bound, bound)
        return w, b

    w1, b1 = linear(ks[0], ks[1], input_dim, hidden_dim)
    w2, b2 = linear(ks[2], ks[3], hidden_dim, hidden_dim)
    w3, b3 = linear(ks[4], ks[5], hidden_dim, output_dim)
    return {"w1": w1, "b1": b1, "w2": w2, "b2": b2, "w3": w3, "b3": b3}


def _reference_forward(x, p):
    h1 = jnp.maximum(x @ p["w1"] + p["b1"], 0.0)
    h2 = jnp.maximum(h1 @ p["w2"] + p["b2"], 0.0)
    logits = h2 @ p["w3"] + p["b3"]
    return jax.nn.softmax(logits, axis=-1)


if __name__ == "__main__":
    # LunarLander-v2: observation dim = 8, action dim = 4; small hidden = 32.
    input_dim, hidden_dim, output_dim = 8, 32, 4
    batch = 8

    key = jax.random.PRNGKey(0)
    k_params, k_x = jax.random.split(key)
    params = init_params(k_params, input_dim, hidden_dim, output_dim)
    x = jax.random.normal(k_x, (batch, input_dim), jnp.float32)

    # Pack once (would be once per policy update in the RL loop), reuse across steps.
    slab = pack_params(params, input_dim, hidden_dim, output_dim)

    probs = policy_network_forward(x, slab, input_dim=input_dim,
                                   hidden_dim=hidden_dim, output_dim=output_dim)
    probs = jax.block_until_ready(probs)

    # Sanity check against a pure-JAX reference.
    ref = _reference_forward(x, params)
    assert probs.shape == (batch, output_dim)
    assert jnp.allclose(jnp.sum(probs, axis=-1), 1.0, atol=1e-4)
    assert jnp.allclose(probs, ref, atol=2e-3, rtol=2e-3)

    print("KERNEL_OK")
</pallas_src>

<mosaic_0001>
module attributes {stable_mosaic.version = 11 : i64} {
  func.func @_policy_mlp_kernel(%arg0: i32, %arg1: memref<8x128xf32, #tpu.memory_space<vmem>>, %arg2: memref<72x33xf32, #tpu.memory_space<vmem>>, %arg3: memref<4x128xf32, #tpu.memory_space<vmem>>) attributes {dimension_semantics = [#tpu.dimension_semantics<parallel>], iteration_bounds = array<i64: 1>, scalar_prefetch = 0 : i64, scratch_operands = 0 : i64, tpu.core_type = #tpu.core_type<tc>, window_params = [{transform_indices = @transform_0, window_bounds = array<i64: 8, 128>}, {pipeline_mode = #tpu.pipeline_mode<synchronous>, transform_indices = @transform_1, window_bounds = array<i64: 72, 33>}, {transform_indices = @transform_2, window_bounds = array<i64: 4, 128>}]} {
    %c0 = arith.constant 0 : index
    %c0_0 = arith.constant 0 : index
    %0 = vector.load %arg1[%c0, %c0_0] : memref<8x128xf32, #tpu.memory_space<vmem>>, vector<8x128xf32>
    %c0_1 = arith.constant 0 : index
    %c0_2 = arith.constant 0 : index
    %1 = vector.load %arg2[%c0_1, %c0_2] : memref<72x33xf32, #tpu.memory_space<vmem>>, vector<32x8xf32>
    %c0_3 = arith.constant 0 : index
    %c32 = arith.constant 32 : index
    %2 = vector.load %arg2[%c0_3, %c32] : memref<72x33xf32, #tpu.memory_space<vmem>>, vector<32x1xf32>
    %c32_4 = arith.constant 32 : index
    %c0_5 = arith.constant 0 : index
    %3 = vector.load %arg2[%c32_4, %c0_5] : memref<72x33xf32, #tpu.memory_space<vmem>>, vector<32x32xf32>
    %c32_6 = arith.constant 32 : index
    %c32_7 = arith.constant 32 : index
    %4 = vector.load %arg2[%c32_6, %c32_7] : memref<72x33xf32, #tpu.memory_space<vmem>>, vector<32x1xf32>
    %c64 = arith.constant 64 : index
    %c0_8 = arith.constant 0 : index
    %5 = vector.load %arg2[%c64, %c0_8] : memref<72x33xf32, #tpu.memory_space<vmem>>, vector<4x32xf32>
    %c64_9 = arith.constant 64 : index
    %c32_10 = arith.constant 32 : index
    %6 = vector.load %arg2[%c64_9, %c32_10] : memref<72x33xf32, #tpu.memory_space<vmem>>, vector<4x1xf32>
    %cst = arith.constant dense<0.000000e+00> : vector<32x128xf32>
    %7 = tpu.matmul %1, %0, %cst {dimension_numbers = #tpu.dot_dimension_numbers<[1], [0], [0], [1], [0, 0, 1, 1], [], []>} : vector<32x8xf32>, vector<8x128xf32>, vector<32x128xf32> -> vector<32x128xf32>
    %8 = vector.broadcast %2 : vector<32x1xf32> to vector<32x128xf32>
    %9 = arith.addf %7, %8 : vector<32x128xf32>
    %cst_11 = arith.constant 0.000000e+00 : f32
    %10 = vector.broadcast %cst_11 : f32 to vector<32x128xf32>
    %11 = arith.maximumf %9, %10 : vector<32x128xf32>
    %cst_12 = arith.constant dense<0.000000e+00> : vector<32x128xf32>
    %12 = tpu.matmul %3, %11, %cst_12 {dimension_numbers = #tpu.dot_dimension_numbers<[1], [0], [0], [1], [0, 0, 1, 1], [], []>} : vector<32x32xf32>, vector<32x128xf32>, vector<32x128xf32> -> vector<32x128xf32>
    %13 = vector.broadcast %4 : vector<32x1xf32> to vector<32x128xf32>
    %14 = arith.addf %12, %13 : vector<32x128xf32>
    %cst_13 = arith.constant 0.000000e+00 : f32
    %15 = vector.broadcast %cst_13 : f32 to vector<32x128xf32>
    %16 = arith.maximumf %14, %15 : vector<32x128xf32>
    %cst_14 = arith.constant dense<0.000000e+00> : vector<4x128xf32>
    %17 = tpu.matmul %5, %16, %cst_14 {dimension_numbers = #tpu.dot_dimension_numbers<[1], [0], [0], [1], [0, 0, 1, 1], [], []>} : vector<4x32xf32>, vector<32x128xf32>, vector<4x128xf32> -> vector<4x128xf32>
    %18 = vector.broadcast %6 : vector<4x1xf32> to vector<4x128xf32>
    %19 = arith.addf %17, %18 : vector<4x128xf32>
    %cst_15 = arith.constant dense<0xFF800000> : vector<128xf32>
    %20 = vector.multi_reduction <maximumf>, %19, %cst_15 [0] : vector<4x128xf32> to vector<128xf32>
    %21 = vector.shape_cast %20 : vector<128xf32> to vector<1x128xf32>
    %22 = vector.broadcast %21 : vector<1x128xf32> to vector<4x128xf32>
    %23 = arith.subf %19, %22 : vector<4x128xf32>
    %24 = math.exp %23 : vector<4x128xf32>
    %cst_16 = arith.constant dense<0.000000e+00> : vector<128xf32>
    %25 = vector.multi_reduction <add>, %24, %cst_16 [0] : vector<4x128xf32> to vector<128xf32>
    %26 = vector.shape_cast %25 : vector<128xf32> to vector<1x128xf32>
    %27 = vector.broadcast %26 : vector<1x128xf32> to vector<4x128xf32>
    %28 = arith.divf %24, %27 : vector<4x128xf32>
    %c0_17 = arith.constant 0 : index
    %c0_18 = arith.constant 0 : index
    %29 = vector.load %arg3[%c0_17, %c0_18] : memref<4x128xf32, #tpu.memory_space<vmem>>, vector<4x128xf32>
    tpu.vector_store %arg3[%c0_17, %c0_18], %28 {strides = array<i32>} : memref<4x128xf32, #tpu.memory_space<vmem>>, vector<4x128xf32>,
    return
  }
  func.func @transform_0(%arg0: i32) -> (i32, i32) {
    %c0_i32 = arith.constant 0 : i32
    %c0_i32_0 = arith.constant 0 : i32
    return %c0_i32, %arg0 : i32, i32
  }
  func.func @transform_1(%arg0: i32) -> (i32, i32) {
    %c0_i32 = arith.constant 0 : i32
    %c0_i32_0 = arith.constant 0 : i32
    %c0_i32_1 = arith.constant 0 : i32
    return %c0_i32, %c0_i32_0 : i32, i32
  }
  func.func @transform_2(%arg0: i32) -> (i32, i32) {
    %c0_i32 = arith.constant 0 : i32
    %c0_i32_0 = arith.constant 0 : i32
    return %c0_i32, %arg0 : i32, i32
  }
}

</mosaic_0001>

<bundles_post_ra>
// kernel: tpu_custom_call.1
= control target key start
LH: loop header
LB: loop body
LE: loop exit
PB: predicated region body
PF: predicated region fallthrough
CT: control target
= control target key end

     0   :  { %vm42_vm0 = vcmask 64512   ;;  %v272_v4 = vmov 32   ;;  %s331_s0 = inlined_call_operand.vmem [shape: f32[8,128], index: 0, kind: input, shape index: {}]   ;;  %s332_s1 = inlined_call_operand.vmem [shape: f32[72,33], index: 1, kind: input, shape index: {}]   ;;  %s333_s2 = inlined_call_operand.hbm [shape: f32[4,128], index: 2, kind: output, shape index: {}]  }
   0x1   :  { %v12_v0 = vld [vmem:[%s331_s0] sm:$0xff]  ;;  %v16_v2 = vld [vmem:[%s332_s1 + $0x18] sm:$0xff]  ;;  %v14_v3 = vld [vmem:[%s332_s1 + $0x8] sm:$0xff]  ;;  %240 = vset.pattern.permute.xlu1 %v272_v4 }
   0x2   :  { %v13_v1 = vld [vmem:[%s332_s1] sm:$0xff]  ;;  %66 = vmatpush.msra.mxu0 %v12_v0  ;;  %232 = vmatpush.msra.mxu2 %v12_v0 }
   0x3   :  { %223 = vmatmul.msk.f32.vlgmr.msra.gmra.mxu0 %vm42_vm0, %v13_v1 }
   0x4   :  { %7 = vsyncpa [#allocation3], 0  ;;  %239 = vset.pattern.permute.xlu0 %v272_v4  ;;  %226 = vmatmul.msk.f32.vlgmr.msra.gmra.mxu2 %vm42_vm0, %v16_v2  ;;  %v15_v5 = vld [vmem:[%s332_s1 + $0x10] sm:$0xff]  ;;  %v18_v6 = vld [vmem:[%s332_s1 + $0x28] sm:$0xff]  ;;  %vm104_vm1 = vcmask 261120   ;;  %vm173_vm2 = vcmask 1043456  }
   0x5   :  { %39 = vperm.xlu0 %239, %v16_v2   ;;  %29 = vperm.xlu1 %240, %v14_v3   ;;  %v17_v7 = vld [vmem:[%s332_s1 + $0x20] sm:$0xff]  ;;  %v20_v9 = vld [vmem:[%s332_s1 + $0x38] sm:$0xff]  ;;  %v19_v15 = vld [vmem:[%s332_s1 + $0x30] sm:$0xff]  ;;  %s214_s3 = sshll.u32 %s333_s2, 4  ;;  %s215_s3 = int_to_ptr.hbm [resolvable:$true] %s214_s3 }
   0x6   :  { %241 = vset.pattern.permute.xlu2 %v272_v4  ;;  %v21_v18 = vld [vmem:[%s332_s1 + $0x40] sm:$0xf]  ;;  %s273_s1 = smov [#allocation2]  }
   0x7   :  { %101 = vperm.xlu2 %241, %v20_v9   ;;  %s212_s28 = sshll.u32 %s273_s1, 4  ;;  %s213_s28 = int_to_ptr.vmem [resolvable:$true] %s212_s28 }
   0xb   :  { %224 = vmatmul.msk.f32.gmra.mxu0 %vm42_vm0, %v14_v3 }
   0xd   :  { %34 = vperm.xlu0 %239, %v15_v5   ;;  %24 = vperm.xlu1 %240, %v13_v1  }
   0xf   :  { %96 = vperm.xlu2 %241, %v19_v15  }
  0x13   :  { %225 = vmatmul.msk.f32.gmra.mxu0 %vm42_vm0, %v15_v5 }
  0x15   :  { %91 = vperm.xlu0 %239, %v18_v6   ;;  %86 = vperm.xlu1 %240, %v17_v7  }
  0x17   :  { %148 = vperm.xlu2 %241, %v21_v18  }
  0x61   :  { %v102_v27 = vpop.permute.xlu2 %101 }
  0x69   :  { %v97_v30 = vpop.permute.xlu2 %96 }
  0x71   :  { %v149_v43 = vpop.permute.xlu2 %148 }
  0x77   :  { %v40_v10 = vpop.permute.xlu0 %39  ;;  %v30_v11 = vpop.permute.xlu1 %29 }
  0x7f   :  { %v35_v17 = vpop.permute.xlu0 %34  ;;  %v25_v19 = vpop.permute.xlu1 %24 }
  0x80   :  { %v68_v8 = vpop.f32.mrf.mxu0 }
  0x81   :  { %v69_v23 = vadd.f32 %v68_v8, %v25_v19 }
  0x83   :  { %v80_v26 = vmax.f32 %v69_v23, 0.0 }
  0x87   :  { %v77_v12 = vpop.f32.mrf.mxu2  ;;  %v92_v35 = vpop.permute.xlu0 %91 }
  0x88   :  { %v71_v13 = vpop.f32.mrf.mxu0  ;;  %v78_v14 = vadd.f32 %v77_v12, %v40_v10  ;;  %v87_v38 = vpop.permute.xlu1 %86 }
  0x89   :  { %v72_v21 = vadd.f32 %v71_v13, %v30_v11 }
  0x8a   :  { %v83_v16 = vmax.f32 %v78_v14, 0.0 }
  0x8b   :  { %v81_v25 = vmax.f32 %v72_v21, 0.0 }
  0x8c   :  { %125 = vmatpush.msra.mxu1 %v83_v16  ;;  %233 = vmatpush.msra.mxu3 %v83_v16 }
  0x90   :  { %v74_v20 = vpop.f32.mrf.mxu0 }
  0x91   :  { %v75_v22 = vadd.f32 %v74_v20, %v35_v17 }
  0x93   :  { %v82_v24 = vmax.f32 %v75_v22, 0.0 }
  0x95   :  { %126 = vmatpush.msra.mxu1 %v82_v24  ;;  %234 = vmatpush.msra.mxu3 %v82_v24 }
  0x97   :  { %127 = vmatpush.msra.mxu1 %v81_v25  ;;  %235 = vmatpush.msra.mxu3 %v81_v25 }
  0x99   :  { %128 = vmatpush.msra.mxu1 %v80_v26  ;;  %236 = vmatpush.msra.mxu3 %v80_v26 }
  0x9a   :  { %227 = vmatmul.msk.f32.vlgmr.msra.gmra.mxu1 %vm104_vm1, %v17_v7  ;;  %229 = vmatmul.msk.f32.vlgmr.msra.gmra.mxu3 %vm104_vm1, %v19_v15 }
  0xa2   :  { %228 = vmatmul.msk.f32.gmra.mxu1 %vm104_vm1, %v18_v6  ;;  %230 = vmatmul.msk.f32.gmra.mxu3 %vm104_vm1, %v20_v9 }
 0x117   :  { %v130_v28 = vpop.f32.mrf.mxu1 }
 0x118   :  { %v131_v39 = vadd.f32 %v130_v28, %v87_v38 }
 0x11a   :  { %v142_v42 = vmax.f32 %v131_v39, 0.0 }
 0x11d   :  { %v136_v29 = vpop.f32.mrf.mxu3 }
 0x11e   :  { %v137_v33 = vadd.f32 %v136_v29, %v97_v30 }
 0x11f   :  { %v133_v31 = vpop.f32.mrf.mxu1 }
 0x120   :  { %v134_v36 = vadd.f32 %v133_v31, %v92_v35  ;;  %v144_v40 = vmax.f32 %v137_v33, 0.0 }
 0x122   :  { %v143_v41 = vmax.f32 %v134_v36, 0.0 }
 0x125   :  { %v139_v32 = vpop.f32.mrf.mxu3 }
 0x126   :  { %v140_v34 = vadd.f32 %v139_v32, %v102_v27 }
 0x128   :  { %v145_v37 = vmax.f32 %v140_v34, 0.0 }
 0x12a   :  { %165 = vmatpush.msrb.mxu2 %v145_v37 }
 0x12c   :  { %166 = vmatpush.msrb.mxu2 %v144_v40 }
 0x12e   :  { %167 = vmatpush.msrb.mxu2 %v143_v41 }
 0x130   :  { %168 = vmatpush.msrb.mxu2 %v142_v42 }
 0x131   :  { %231 = vmatmul.msk.f32.vlgmr.msrb.gmra.mxu2 %vm104_vm1, %v21_v18 }
 0x1b4   :  { %v170_v44 = vpop.f32.mrf.mxu2 }
 0x1b5   :  { %v171_v45 = vadd.f32 %v170_v44, %v149_v43 }
 0x1b7   :  { %v174_v46 = vsel %vm173_vm2, %v171_v45, -inf }
 0x1b8   :  { %v175_v47 = vrot.slane %v174_v46, 4 }
 0x1ba   :  { %v176_v48 = vmax.f32 %v174_v46, %v175_v47 }
 0x1bc   :  { %v177_v49 = vrot.slane %v176_v48, 2 }
 0x1be   :  { %v178_v50 = vmax.f32 %v176_v48, %v177_v49 }
 0x1c0   :  { %v179_v51 = vrot.slane %v178_v50, 1 }
 0x1c2   :  { %v180_v52 = vmax.f32 %v178_v50, %v179_v51 }
 0x1c4   :  { %v181_v53 = vsub.f32 %v171_v45, %v180_v52 }
 0x1c6   :  { %v182_v54 = vmul.f32 1.442695, %v181_v53 }
 0x1c8   :  { %242 = vpow2.f32 %v182_v54 }
 0x1ce   :  { %v243_v55 = vpop.eup %242 }
 0x1cf   :  { %v184_v56 = vsel %vm173_vm2, %v243_v55, 0.0 }
 0x1d0   :  { %v185_v57 = vrot.slane %v184_v56, 4 }
 0x1d2   :  { %v186_v58 = vadd.f32 %v185_v57, %v184_v56 }
 0x1d4   :  { %v187_v59 = vrot.slane %v186_v58, 2 }
 0x1d6   :  { %v188_v60 = vadd.f32 %v187_v59, %v186_v58 }
 0x1d8   :  { %v189_v61 = vrot.slane %v188_v60, 1 }
 0x1da   :  { %v190_v62 = vadd.f32 %v189_v61, %v188_v60 }
 0x1dc   :  { %244 = vrcp.f32 %v190_v62  ;;  %v202_v2 = vand.u32 2147483648, %v190_v62  ;;  %v200_v4 = vand.u32 2147483647, %v190_v62  ;;  %vm196_vm4 = vweird.f32 %v190_v62 }
 0x1de   :  { %v203_v6 = vor.u32 1.1754944e-38, %v202_v2  ;;  %vm201_vm6 = vcmp.eq.f32.partialorder %v200_v4, 8.507059e+37 }
 0x1e2   :  { %v245_v63 = vpop.eup %244 }
 0x1e3   :  { %v192_v0 = vmul.f32 %v245_v63, %v190_v62  ;;  %vm197_vm3 = vweird.f32 %v245_v63 }
 0x1e4   :  { %vm198_vm5 = vmor %vm196_vm4, %vm197_vm3 }
 0x1e5   :  { %v193_v1 = vsub.f32 1.0, %v192_v0 }
 0x1e7   :  { %v194_v3 = vmul.f32 %v245_v63, %v193_v1 }
 0x1e9   :  { %v195_v5 = vadd.f32 %v245_v63, %v194_v3 }
 0x1eb   :  { %v199_v7 = vsel %vm198_vm5, %v245_v63, %v195_v5 }
 0x1ec   :  { %v204_v8 = vsel %vm201_vm6, %v203_v6, %v199_v7 }
 0x1ed   :  { %v205_v9 = vmul.f32 %v243_v55, %v204_v8 }
 0x1ef   :  { %206 = vst [vmem:[#allocation2] sm:$0xf] %v205_v9 }
 0x1f0   :  { %217 = dma.vmem_to_hbm [thread:$0]  %s213_s28, 64, %s215_s3, [#allocation3]  }
 0x1f1   :  { %270 = dma.done.wait [#allocation3], 64  }
 0x1f2   :  { %271 = vsyncadd [#allocation3], 4294967232 }
 0x1f3   :  { %222 = vsyncpa [#allocation3], 1 }

</bundles_post_ra>
